<compile_context>
chip_gen: v7x
topology: tpu7x:2x2x1
jax: 0.10.0
libtpu: 0.0.40
codegen_flags: <defaults>
</compile_context>

<pallas_src>
import jax
import jax.numpy as jnp
import numpy as np
from jax.experimental import pallas as pl
from jax.experimental.pallas import tpu as pltpu


# ---------------------------------------------------------------------------
# Fused kernel: folded-BN + ReLU + 2x2 avg-pool + 1x1 conv (matmul)
#   x_ref : (4, TR, Cin)  matmul_dtype -- slab s holds window pixel s of TR
#                                         output positions
#   scale/bias : (1, Cin) f32          -- BN affine with the 0.25 pool factor
#                                         already folded in
#   w_ref : (Cin, Cout)   matmul_dtype -- 1x1 conv weight, transposed
#   o_ref : (TR, Cout)    f32
# ---------------------------------------------------------------------------
def _transition_kernel(x_ref, scale_ref, bias_ref, w_ref, o_ref):
    scale = scale_ref[...]                                  # (1, Cin) f32
    bias = bias_ref[...]                                    # (1, Cin) f32

    # BN(folded) + ReLU per 2x2 window pixel in f32 (VPU; v5e has no bf16
    # VALU), then the pool is just three adds of (TR, Cin) tiles -- the 0.25
    # factor is folded into scale/bias.
    y0 = jnp.maximum(x_ref[0].astype(jnp.float32) * scale + bias, 0.0)
    y1 = jnp.maximum(x_ref[1].astype(jnp.float32) * scale + bias, 0.0)
    y2 = jnp.maximum(x_ref[2].astype(jnp.float32) * scale + bias, 0.0)
    y3 = jnp.maximum(x_ref[3].astype(jnp.float32) * scale + bias, 0.0)
    y_pool = y0 + y1 + y2 + y3                              # (TR, Cin)

    # 1x1 conv == per-pixel matmul over channels (MXU).  Cast only at the dot
    # (bf16 inputs by default, f32 accumulation).
    o_ref[...] = jnp.dot(
        y_pool.astype(w_ref.dtype), w_ref[...],
        preferred_element_type=jnp.float32,
    ).astype(o_ref.dtype)


def _round_up(a, b):
    return ((a + b - 1) // b) * b


# ---------------------------------------------------------------------------
# Wrapper
# ---------------------------------------------------------------------------
def transition_block(x_nchw, gamma, beta, conv_w, eps=1e-5,
                     matmul_dtype=jnp.bfloat16):
    """TransitionBlock forward (PyTorch training-mode BatchNorm semantics).

    x_nchw : (N, Cin, H, W) float32
    gamma, beta : (Cin,) BatchNorm affine parameters
    conv_w : (Cout, Cin) 1x1 conv weight (no bias)
    matmul_dtype : dtype the input slabs + MXU matmul inputs are carried in
                   (bf16 recommended; f32 gives ~1e-5-accurate PyTorch math).
    """
    N, Cin, H, W = x_nchw.shape
    Cout = conv_w.shape[0]
    Ho, Wo = H // 2, W // 2
    R = N * Ho * Wo

    x = x_nchw.astype(jnp.float32)

    # --- BN batch statistics (single fused pass over x) ---------------------
    # sum and sum-of-squares in one reduction; biased variance (training mode).
    n_elem = N * H * W
    s1 = jnp.sum(x, axis=(0, 2, 3))                          # (Cin,)
    s2 = jnp.sum(x * x, axis=(0, 2, 3))                      # (Cin,)
    mean = s1 / n_elem
    var = jnp.maximum(s2 / n_elem - mean * mean, 0.0)
    inv = gamma.astype(jnp.float32) / jnp.sqrt(var + eps)
    # Fold the 2x2 avg-pool 1/4 into the affine:
    #   relu(0.25*s*x + 0.25*b) == 0.25 * relu(s*x + b)   (since 0.25 > 0)
    scale = (0.25 * inv).reshape(1, Cin)
    bias = (0.25 * (beta.astype(jnp.float32) - mean * inv)).reshape(1, Cin)

    # --- glue: channels-last, 2x2 window pixels as 4 row slabs, bf16 --------
    xh = jnp.transpose(x, (0, 2, 3, 1))                      # (N, H, W, Cin)
    xh = xh.reshape(N, Ho, 2, Wo, 2, Cin)
    xh = jnp.transpose(xh, (2, 4, 0, 1, 3, 5))               # (2,2,N,Ho,Wo,Cin)
    x4 = xh.reshape(4, R, Cin).astype(matmul_dtype)          # slab s = 2*dy+dx

    in_itemsize = jnp.dtype(matmul_dtype).itemsize

    # --- per-generation tile sizing ------------------------------------------
    try:
        vmem_cap = int(pltpu.get_tpu_info().vmem_capacity_bytes)
    except Exception:
        vmem_cap = 64 << 20                                  # conservative (v7x)
    if vmem_cap >= (100 << 20):                              # v5e / v6e (128 MiB)
        budget_bytes, row_cap, vmem_ceiling = 16 << 20, 2048, 96 << 20
    else:                                                    # v7x (64 MiB)
        budget_bytes, row_cap, vmem_ceiling = 8 << 20, 1024, 48 << 20

    tr = budget_bytes // (4 * Cin * in_itemsize)
    tr = max(16, min(row_cap, (tr // 16) * 16))              # multiple of 16 (bf16)
    # Keep at least ~8 grid steps so double-buffering (and both v7x TCs) stay live.
    min_steps = 8
    tr = min(tr, max(16, _round_up(pl.cdiv(R, min_steps), 16)))
    r_pad = _round_up(R, tr)
    if r_pad != R:
        # pad rows to a tile multiple (padded rows are dropped after the call)
        x4 = jnp.pad(x4, ((0, 0), (0, r_pad - R), (0, 0)))

    w_t = jnp.asarray(conv_w, jnp.float32).T.astype(matmul_dtype)  # (Cin, Cout)

    grid = (r_pad // tr,)
    # VMEM need: double-buffered x tile + double-buffered out tile + resident
    # weight + scale/bias, with headroom for Mosaic internal scratch.
    need = (2 * (4 * tr * Cin * in_itemsize)
            + 2 * (tr * Cout * 4)
            + Cin * Cout * in_itemsize
            + 2 * Cin * 4)
    vmem_limit = min(max(int(need * 1.5) + (4 << 20), 32 << 20), vmem_ceiling)

    out2d = pl.pallas_call(
        _transition_kernel,
        out_shape=jax.ShapeDtypeStruct((r_pad, Cout), jnp.float32),
        grid_spec=pltpu.PrefetchScalarGridSpec(
            num_scalar_prefetch=0,
            grid=grid,
            in_specs=[
                pl.BlockSpec((4, tr, Cin), lambda i: (0, i, 0)),   # x slabs
                pl.BlockSpec((1, Cin), lambda i: (0, 0)),          # scale (resident)
                pl.BlockSpec((1, Cin), lambda i: (0, 0)),          # bias  (resident)
                pl.BlockSpec((Cin, Cout), lambda i: (0, 0)),       # weight (resident)
            ],
            out_specs=pl.BlockSpec((tr, Cout), lambda i: (i, 0)),
        ),
        compiler_params=pltpu.CompilerParams(
            dimension_semantics=("parallel",),     # independent row tiles -> megacore
            vmem_limit_bytes=vmem_limit,
        ),
    )(x4, scale, bias, w_t)

    # --- glue: back to NCHW ---------------------------------------------------
    out = out2d[:R].reshape(N, Ho, Wo, Cout)
    return jnp.transpose(out, (0, 3, 1, 2))                  # (N, Cout, Ho, Wo)


# ---------------------------------------------------------------------------
# Pure-JAX reference (PyTorch training-mode semantics, f32)
# ---------------------------------------------------------------------------
def _reference(x, gamma, beta, conv_w, eps=1e-5):
    mean = jnp.mean(x, axis=(0, 2, 3), keepdims=True)
    var = jnp.var(x, axis=(0, 2, 3), keepdims=True)           # biased
    y = (x - mean) / jnp.sqrt(var + eps)
    y = y * gamma.reshape(1, -1, 1, 1) + beta.reshape(1, -1, 1, 1)
    y = jnp.maximum(y, 0.0)
    z = jnp.einsum('nchw,oc->nohw', y, conv_w)
    N, Co, H, W = z.shape
    return z.reshape(N, Co, H // 2, 2, W // 2, 2).mean(axis=(3, 5))


if __name__ == "__main__":
    # TransitionBlock(in_feature=4, compression=0.5) -> out_feature = 2
    N, Cin, H, W = 2, 4, 16, 16
    Cout = int(Cin * 0.5)

    key = jax.random.PRNGKey(0)
    kx, kg, kb, kw = jax.random.split(key, 4)
    x = jax.random.normal(kx, (N, Cin, H, W), dtype=jnp.float32)
    gamma = jax.random.normal(kg, (Cin,), dtype=jnp.float32) * 0.5 + 1.0
    beta = jax.random.normal(kb, (Cin,), dtype=jnp.float32) * 0.1
    conv_w = jax.random.normal(kw, (Cout, Cin), dtype=jnp.float32) * 0.3  # 1x1 conv

    ref = jax.block_until_ready(_reference(x, gamma, beta, conv_w))

    # Precision path (f32 slabs + f32 matmul) -- close-tolerance check.
    out_f32 = jax.block_until_ready(
        transition_block(x, gamma, beta, conv_w, matmul_dtype=jnp.float32))
    assert out_f32.shape == (N, Cout, H // 2, W // 2), out_f32.shape
    np.testing.assert_allclose(np.asarray(out_f32), np.asarray(ref),
                               rtol=1e-5, atol=1e-5)

    # Production path (bf16 slabs + bf16 MXU inputs, f32 accumulation).
    out_bf16 = jax.block_until_ready(
        transition_block(x, gamma, beta, conv_w, matmul_dtype=jnp.bfloat16))
    np.testing.assert_allclose(np.asarray(out_bf16), np.asarray(ref),
                               rtol=5e-2, atol=5e-2)

    print("KERNEL_OK")
</pallas_src>

<mosaic_0001>
module attributes {stable_mosaic.version = 11 : i64} {
  func.func @_transition_kernel(%arg0: i32, %arg1: memref<4x16x4xf32, #tpu.memory_space<vmem>>, %arg2: memref<1x4xf32, #tpu.memory_space<vmem>>, %arg3: memref<1x4xf32, #tpu.memory_space<vmem>>, %arg4: memref<4x2xf32, #tpu.memory_space<vmem>>, %arg5: memref<16x2xf32, #tpu.memory_space<vmem>>) attributes {dimension_semantics = [#tpu.dimension_semantics<parallel>], iteration_bounds = array<i64: 8>, scalar_prefetch = 0 : i64, scratch_operands = 0 : i64, tpu.core_type = #tpu.core_type<tc>, window_params = [{transform_indices = @transform_0, window_bounds = array<i64: 4, 16, 4>}, {pipeline_mode = #tpu.pipeline_mode<synchronous>, transform_indices = @transform_1, window_bounds = array<i64: 1, 4>}, {pipeline_mode = #tpu.pipeline_mode<synchronous>, transform_indices = @transform_2, window_bounds = array<i64: 1, 4>}, {pipeline_mode = #tpu.pipeline_mode<synchronous>, transform_indices = @transform_3, window_bounds = array<i64: 4, 2>}, {transform_indices = @transform_4, window_bounds = array<i64: 16, 2>}]} {
    %c0 = arith.constant 0 : index
    %c0_0 = arith.constant 0 : index
    %0 = vector.load %arg2[%c0, %c0_0] : memref<1x4xf32, #tpu.memory_space<vmem>>, vector<1x4xf32>
    %c0_1 = arith.constant 0 : index
    %c0_2 = arith.constant 0 : index
    %1 = vector.load %arg3[%c0_1, %c0_2] : memref<1x4xf32, #tpu.memory_space<vmem>>, vector<1x4xf32>
    %c0_3 = arith.constant 0 : index
    %c0_4 = arith.constant 0 : index
    %c0_5 = arith.constant 0 : index
    %2 = vector.load %arg1[%c0_3, %c0_4, %c0_5] : memref<4x16x4xf32, #tpu.memory_space<vmem>>, vector<1x16x4xf32>
    %3 = vector.shape_cast %2 : vector<1x16x4xf32> to vector<16x4xf32>
    %4 = vector.broadcast %0 : vector<1x4xf32> to vector<16x4xf32>
    %5 = arith.mulf %3, %4 : vector<16x4xf32>
    %6 = vector.broadcast %1 : vector<1x4xf32> to vector<16x4xf32>
    %7 = arith.addf %5, %6 : vector<16x4xf32>
    %cst = arith.constant 0.000000e+00 : f32
    %8 = vector.broadcast %cst : f32 to vector<16x4xf32>
    %9 = arith.maximumf %7, %8 : vector<16x4xf32>
    %c1 = arith.constant 1 : index
    %c0_6 = arith.constant 0 : index
    %c0_7 = arith.constant 0 : index
    %10 = vector.load %arg1[%c1, %c0_6, %c0_7] : memref<4x16x4xf32, #tpu.memory_space<vmem>>, vector<1x16x4xf32>
    %11 = vector.shape_cast %10 : vector<1x16x4xf32> to vector<16x4xf32>
    %12 = vector.broadcast %0 : vector<1x4xf32> to vector<16x4xf32>
    %13 = arith.mulf %11, %12 : vector<16x4xf32>
    %14 = vector.broadcast %1 : vector<1x4xf32> to vector<16x4xf32>
    %15 = arith.addf %13, %14 : vector<16x4xf32>
    %cst_8 = arith.constant 0.000000e+00 : f32
    %16 = vector.broadcast %cst_8 : f32 to vector<16x4xf32>
    %17 = arith.maximumf %15, %16 : vector<16x4xf32>
    %c2 = arith.constant 2 : index
    %c0_9 = arith.constant 0 : index
    %c0_10 = arith.constant 0 : index
    %18 = vector.load %arg1[%c2, %c0_9, %c0_10] : memref<4x16x4xf32, #tpu.memory_space<vmem>>, vector<1x16x4xf32>
    %19 = vector.shape_cast %18 : vector<1x16x4xf32> to vector<16x4xf32>
    %20 = vector.broadcast %0 : vector<1x4xf32> to vector<16x4xf32>
    %21 = arith.mulf %19, %20 : vector<16x4xf32>
    %22 = vector.broadcast %1 : vector<1x4xf32> to vector<16x4xf32>
    %23 = arith.addf %21, %22 : vector<16x4xf32>
    %cst_11 = arith.constant 0.000000e+00 : f32
    %24 = vector.broadcast %cst_11 : f32 to vector<16x4xf32>
    %25 = arith.maximumf %23, %24 : vector<16x4xf32>
    %c3 = arith.constant 3 : index
    %c0_12 = arith.constant 0 : index
    %c0_13 = arith.constant 0 : index
    %26 = vector.load %arg1[%c3, %c0_12, %c0_13] : memref<4x16x4xf32, #tpu.memory_space<vmem>>, vector<1x16x4xf32>
    %27 = vector.shape_cast %26 : vector<1x16x4xf32> to vector<16x4xf32>
    %28 = vector.broadcast %0 : vector<1x4xf32> to vector<16x4xf32>
    %29 = arith.mulf %27, %28 : vector<16x4xf32>
    %30 = vector.broadcast %1 : vector<1x4xf32> to vector<16x4xf32>
    %31 = arith.addf %29, %30 : vector<16x4xf32>
    %cst_14 = arith.constant 0.000000e+00 : f32
    %32 = vector.broadcast %cst_14 : f32 to vector<16x4xf32>
    %33 = arith.maximumf %31, %32 : vector<16x4xf32>
    %34 = arith.addf %9, %17 : vector<16x4xf32>
    %35 = arith.addf %34, %25 : vector<16x4xf32>
    %36 = arith.addf %35, %33 : vector<16x4xf32>
    %c0_15 = arith.constant 0 : index
    %c0_16 = arith.constant 0 : index
    %37 = vector.load %arg4[%c0_15, %c0_16] : memref<4x2xf32, #tpu.memory_space<vmem>>, vector<4x2xf32>
    %cst_17 = arith.constant dense<0.000000e+00> : vector<16x2xf32>
    %38 = tpu.matmul %36, %37, %cst_17 {dimension_numbers = #tpu.dot_dimension_numbers<[1], [0], [0], [1], [0, 0, 1, 1], [], []>} : vector<16x4xf32>, vector<4x2xf32>, vector<16x2xf32> -> vector<16x2xf32>
    %c0_18 = arith.constant 0 : index
    %c0_19 = arith.constant 0 : index
    %39 = vector.load %arg5[%c0_18, %c0_19] : memref<16x2xf32, #tpu.memory_space<vmem>>, vector<16x2xf32>
    tpu.vector_store %arg5[%c0_18, %c0_19], %38 {strides = array<i32>} : memref<16x2xf32, #tpu.memory_space<vmem>>, vector<16x2xf32>,
    return
  }
  func.func @transform_0(%arg0: i32) -> (i32, i32, i32) {
    %c0_i32 = arith.constant 0 : i32
    %c0_i32_0 = arith.constant 0 : i32
    %c0_i32_1 = arith.constant 0 : i32
    return %c0_i32, %arg0, %c0_i32_0 : i32, i32, i32
  }
  func.func @transform_1(%arg0: i32) -> (i32, i32) {
    %c0_i32 = arith.constant 0 : i32
    %c0_i32_0 = arith.constant 0 : i32
    %c0_i32_1 = arith.constant 0 : i32
    return %c0_i32, %c0_i32_0 : i32, i32
  }
  func.func @transform_2(%arg0: i32) -> (i32, i32) {
    %c0_i32 = arith.constant 0 : i32
    %c0_i32_0 = arith.constant 0 : i32
    %c0_i32_1 = arith.constant 0 : i32
    return %c0_i32, %c0_i32_0 : i32, i32
  }
  func.func @transform_3(%arg0: i32) -> (i32, i32) {
    %c0_i32 = arith.constant 0 : i32
    %c0_i32_0 = arith.constant 0 : i32
    %c0_i32_1 = arith.constant 0 : i32
    return %c0_i32, %c0_i32_0 : i32, i32
  }
  func.func @transform_4(%arg0: i32) -> (i32, i32) {
    %c0_i32 = arith.constant 0 : i32
    %c0_i32_0 = arith.constant 0 : i32
    return %arg0, %c0_i32 : i32, i32
  }
}

</mosaic_0001>

<bundles_post_ra>
// kernel: tpu_custom_call.1
= control target key start
LH: loop header
LB: loop body
LE: loop exit
PB: predicated region body
PF: predicated region fallthrough
CT: control target
= control target key end

     0   :  { %s576_s15 = smov 0   ;;  %s578_s16 = smov 0   ;;  %s637_s0 = inlined_call_operand.vmem [shape: f32[4,128,4], index: 0, kind: input, shape index: {}]   ;;  %s638_s1 = inlined_call_operand.vmem [shape: f32[1,4], index: 1, kind: input, shape index: {}]   ;;  %s639_s2 = inlined_call_operand.vmem [shape: f32[1,4], index: 2, kind: input, shape index: {}]   ;;  %s640_s3 = inlined_call_operand.vmem [shape: f32[4,2], index: 3, kind: input, shape index: {}]   ;;  %s641_s4 = inlined_call_operand.vmem [shape: f32[128,2], index: 4, kind: output, shape index: {}]  }
   0x1   :  { %s580_s17 = smov 0  }
   0x2 LB: > { %s470_s18 = sadd.s32 4294967295, %s549_s17   ;;  %s593_s19 = sadd.s32 1, %s549_s17   ;;  %s549_s17 = sphi %s580_s17, %s644_s17   ;;  %s545_s16 = sphi %s578_s16, %s643_s16   ;;  %s541_s15 = sphi %s576_s15, %s642_s15  }
   0x3   : > { %s18_s20 = ssub.s32 %s549_s17, %s593_s19  ;;  %s21_s21 = sadd.s32 1, %s545_s16 }
   0x4   : > { %p19_p0 = scmp.eq.s32.totalorder %s18_s20, 0  ;;  %p28_p1 = scmp.ne.s32.totalorder %s545_s16, %s541_s15 }
   0x5   : > { %p29_p2 = scmp.eq.s32.totalorder %s549_s17, 0  ;;  %p473_p4 = scmp.ge.s32.totalorder %s549_s17, 8 }
   0x6   : > { %s602_s22 = scalar_select %p19_p0, %s545_s16, %s21_s21  }
   0x7   : > { %p30_p3 = por %p29_p2, %p28_p1  ;;  %152 = sbr.rel (%p473_p4) target bundleno = 22 (0x16), region = 28 }
   0xe   : > { %155 = sbr.rel (!%p30_p3) target bundleno = 22 (0x16), region = 32  ;;  %s157_s23 = sand.u32 (%p30_p3), 1, %s545_s16  }
   0xf   : > { %s494_s24 = sshll.u32 (%p30_p3), %s549_s17, 4  ;;  %s474_s25 = sshll.u32 (%p30_p3), %s157_s23, 6 }
  0x10   : > { %s162_s28 = scalar_lea.vmem (%p30_p3), %s637_s0, %s494_s24  ;;  %s159_s29 = scalar_lea.vmem (%p30_p3), [#allocation2], %s474_s25 }
  0x11   : > { %v204_v0 = vld [vmem:[%s162_s28] sm:$0xff] (%p30_p3)  ;;  %v206_v1 = vld [vmem:[%s162_s28 + $0x8] sm:$0xff] (%p30_p3) }
  0x12   : > { %v208_v2 = vld [vmem:[%s162_s28 + $0x80] sm:$0xff] (%p30_p3)  ;;  %205 = vst [vmem:[%s159_s29] sm:$0xff] (%p30_p3), %v204_v0  ;;  %207 = vst [vmem:[%s159_s29 + $0x8] sm:$0xff] (%p30_p3), %v206_v1  ;;  %v210_v3 = vld [vmem:[%s162_s28 + $0x88] sm:$0xff] (%p30_p3) }
  0x13   : > { %209 = vst [vmem:[%s159_s29 + $0x10] sm:$0xff] (%p30_p3), %v208_v2  ;;  %v212_v4 = vld [vmem:[%s162_s28 + $0x100] sm:$0xff] (%p30_p3)  ;;  %v214_v5 = vld [vmem:[%s162_s28 + $0x108] sm:$0xff] (%p30_p3)  ;;  %211 = vst [vmem:[%s159_s29 + $0x18] sm:$0xff] (%p30_p3), %v210_v3 }
  0x14   : > { %213 = vst [vmem:[%s159_s29 + $0x20] sm:$0xff] (%p30_p3), %v212_v4  ;;  %215 = vst [vmem:[%s159_s29 + $0x28] sm:$0xff] (%p30_p3), %v214_v5  ;;  %v216_v6 = vld [vmem:[%s162_s28 + $0x180] sm:$0xff] (%p30_p3)  ;;  %v218_v7 = vld [vmem:[%s162_s28 + $0x188] sm:$0xff] (%p30_p3) }
  0x15   : > { %217 = vst [vmem:[%s159_s29 + $0x30] sm:$0xff] %v216_v6  ;;  %219 = vst [vmem:[%s159_s29 + $0x38] sm:$0xff] %v218_v7 }
  0x16 PF: > { %p477_p5 = scmp.ge.s32.totalorder %s549_s17, 1  ;;  %p224_p6 = scmp.lt.s32.totalorder %s549_s17, 9 }
  0x18   : > { %p225_p7 = pnand %p477_p5, %p224_p6 }
  0x19   : > { %v318_v8 = vld [vmem:[%s640_s3] sm:$0xf] (!%p225_p7)  ;;  %vm326_vm0 = vcmask (!%p225_p7), 1043456   ;;  %s231_s6 = sand.u32 (!%p225_p7), 1, %s541_s15   ;;  %vm319_vm1 = vcmask (!%p225_p7), 31744   ;;  %s479_s13 = sshll.u32 (!%p225_p7), %s470_s18, 1 }
  0x1a   : > { %228 = sbr.rel (%p225_p7) target bundleno = 256 (0x100), region = 70  ;;  %498 = vmatprep.subr.msk.mxu0 (!%p225_p7), %vm326_vm0, %v318_v8  ;;  %s478_s7 = sshll.u32 (!%p225_p7), %s231_s6, 6  ;;  %v481_v9 = vld [vmem:[%s638_s1] ss:$0 sm:$0xff] (!%p225_p7)  ;;  %vm405_vm2 = vcmask (!%p225_p7), 15360  }
  0x1b   : > { %499 = vmatpush3.msk.msra.mxu0 (!%p225_p7), %vm326_vm0, %v318_v8  ;;  %v482_v10 = vld [vmem:[%s639_s2] ss:$0 sm:$0xff] (!%p225_p7)  ;;  %s233_s12 = scalar_lea.vmem (!%p225_p7), [#allocation2], %s478_s7  ;;  %p258_p8 = scmp.lt.s32.totalorder (!%p225_p7), %s479_s13, 15 }
  0x1c   : > { %v265_v11 = vld [vmem:[%s233_s12] sm:$0xff] (!%p225_p7)  ;;  %v483_v12 = vld [vmem:[%s233_s12 + $0x10] sm:$0xff] (!%p225_p7)  ;;  %v266_v18 = vld [vmem:[%s233_s12 + $0x8] sm:$0xff] (!%p225_p7) }
  0x1d   : > { %v485_v13 = vld [vmem:[%s233_s12 + $0x20] sm:$0xff] (!%p225_p7)  ;;  %v273_v14 = vmul.f32 (!%p225_p7), %v481_v9, %v265_v11  ;;  %v288_v15 = vmul.f32 (!%p225_p7), %v483_v12, %v481_v9  ;;  %v487_v17 = vld [vmem:[%s233_s12 + $0x30] sm:$0xff] (!%p225_p7)  ;;  %v484_v19 = vld [vmem:[%s233_s12 + $0x18] sm:$0xff] (!%p225_p7)  ;;  %v274_v21 = vmul.f32 (!%p225_p7), %v481_v9, %v266_v18 }
  0x1e   : > { %v297_v16 = vmul.f32 (!%p225_p7), %v485_v13, %v481_v9  ;;  %v306_v20 = vmul.f32 (!%p225_p7), %v487_v17, %v481_v9  ;;  %v289_v22 = vmul.f32 (!%p225_p7), %v484_v19, %v481_v9  ;;  %v486_v23 = vld [vmem:[%s233_s12 + $0x28] sm:$0xff] (!%p225_p7)  ;;  %v488_v24 = vld [vmem:[%s233_s12 + $0x38] sm:$0xff] (!%p225_p7) }
  0x1f   : > { %v281_v25 = vadd.f32 (!%p225_p7), %v482_v10, %v273_v14  ;;  %v290_v26 = vadd.f32 (!%p225_p7), %v482_v10, %v288_v15  ;;  %v298_v28 = vmul.f32 (!%p225_p7), %v486_v23, %v481_v9  ;;  %v282_v30 = vadd.f32 (!%p225_p7), %v482_v10, %v274_v21 }
  0x20   : > { %v299_v27 = vadd.f32 (!%p225_p7), %v482_v10, %v297_v16  ;;  %v308_v29 = vadd.f32 (!%p225_p7), %v482_v10, %v306_v20  ;;  %v291_v31 = vadd.f32 (!%p225_p7), %v482_v10, %v289_v22  ;;  %v307_v32 = vmul.f32 (!%p225_p7), %v488_v24, %v481_v9 }
  0x21   : > { %v283_v33 = vmax.f32 %v281_v25, 0.0  ;;  %v292_v34 = vmax.f32 %v290_v26, 0.0  ;;  %v300_v36 = vadd.f32 %v482_v10, %v298_v28  ;;  %v284_v37 = vmax.f32 %v282_v30, 0.0  ;;  %s646_s13 = smov (!%p258_p8, %s479_s13), 15 }
  0x22   : > { %v301_v35 = vmax.f32 %v299_v27, 0.0  ;;  %v293_v38 = vmax.f32 %v291_v31, 0.0  ;;  %v309_v39 = vadd.f32 %v482_v10, %v307_v32  ;;  %v310_v40 = vmax.f32 %v308_v29, 0.0  ;;  %s480_s14 = sshll.u32 %s646_s13, 3 }
  0x23   : > { %v312_v41 = vadd.f32 %v292_v34, %v283_v33  ;;  %v302_v42 = vmax.f32 %v300_v36, 0.0  ;;  %s261_s21 = scalar_lea.vmem %s641_s4, %s480_s14 }
  0x24   : > { %v311_v43 = vmax.f32 %v309_v39, 0.0  ;;  %v313_v44 = vadd.f32 %v293_v38, %v284_v37 }
  0x25   : > { %v314_v45 = vadd.f32 %v312_v41, %v301_v35 }
  0x26   : > { %v315_v46 = vadd.f32 %v313_v44, %v302_v42 }
  0x27   : > { %v316_v47 = vadd.f32 %v314_v45, %v310_v40 }
  0x28   : > { %v317_v48 = vadd.f32 %v315_v46, %v311_v43 }
  0x29   : > { %500 = vmatprep.mubr.msk.f32.mxu0 %vm319_vm1, %v316_v47 }
  0x2a   : > { %501 = vmatmul.mubr.msk.f32.vlgmr.msra.gmra.mrb[0].mxu0 %vm319_vm1, %v317_v48 }
  0xfd   : > { %v502_v49 = vpop.f32.mrb[0].mxu0 }
  0xfe   : > { %407 = vst.msk [vmem:[%s261_s21 + $0x8] sm:$0xff] %vm405_vm2, %v502_v49  ;;  %v396_v50 = vpop.f32.mrb[1].mxu0 }
  0xff   : > { %406 = vst.msk [vmem:[%s261_s21] sm:$0xff] %vm405_vm2, %v396_v50 }
 0x100 PF: > { %p11_p9 = scmp.ge.s32.totalorder %s593_s19, 10   ;;  %s642_s15 = smov %s545_s16 }
 0x101   : > { %s643_s16 = smov %s602_s22  ;;  %s644_s17 = smov %s593_s19 }
 0x102   :  { %13 = sbr.rel (!%p11_p9) target bundleno = 2 (0x2), region = 112 }

</bundles_post_ra>
